<compile_context>
chip_gen: v6e
topology: v6e:2x2x1
jax: 0.10.0
libtpu: 0.0.40
codegen_flags: <defaults>
</compile_context>

<pallas_src>
import functools

import jax
import jax.numpy as jnp
from jax.experimental import pallas as pl
from jax.experimental.pallas import tpu as pltpu


def _round_up(a: int, m: int) -> int:
    return (a + m - 1) // m * m


# --------------------------------------------------------------------------
# Prologue kernel: h2 = SiLU(SiLU(x @ w1 + b1) @ w2 + b2)   (tiny: <0.1% FLOPs)
# --------------------------------------------------------------------------
def _fc12_kernel(x_ref, w1_ref, b1_ref, w2_ref, b2_ref, h2_ref, *,
                 compute_dtype):
    h1 = jnp.dot(x_ref[...], w1_ref[...], preferred_element_type=jnp.float32)
    h1 = h1 + b1_ref[...]
    h1 = h1 * jax.nn.sigmoid(h1)                       # SiLU
    h2 = jnp.dot(h1.astype(compute_dtype), w2_ref[...],
                 preferred_element_type=jnp.float32)
    h2 = h2 + b2_ref[...]
    h2 = h2 * jax.nn.sigmoid(h2)                       # SiLU
    h2_ref[...] = h2.astype(h2_ref.dtype)


# --------------------------------------------------------------------------
# Main kernel: out = tanh(h2 @ w3 + b3), streamed over (N tiles, batch tiles).
# N is the OUTER grid axis so each w3 tile is fetched from HBM exactly once.
# --------------------------------------------------------------------------
def _fc3_kernel(h2_ref, w3_ref, b3_ref, out_ref):
    h3 = jnp.dot(h2_ref[...], w3_ref[...], preferred_element_type=jnp.float32)
    h3 = h3 + b3_ref[...]
    out_ref[...] = jnp.tanh(h3).astype(out_ref.dtype)


def fc_decoder(x, params, *, ch, shape, compute_dtype=jnp.bfloat16,
               out_dtype=jnp.float32):
    """x: (B, latent_dim) float32 -> (B, ch, shape, shape) out_dtype."""
    w1, b1, w2, b2, w3, b3 = params
    B, latent_dim = x.shape
    out_dim = ch * shape * shape
    cb = jnp.dtype(compute_dtype).itemsize
    ob = jnp.dtype(out_dtype).itemsize

    # ---- tile sizing -------------------------------------------------------
    # Batch tile: 16-aligned for bf16 sublane packing (8 for f32); cap at 256.
    align = 16 if cb < 4 else 8
    TB = 256 if B >= 256 else max(_round_up(B, align), align)
    Bp = _round_up(B, TB)
    # fc3 output tile: lane-dense multiple of 128; single tile when it fits,
    # otherwise stream 4096-wide tiles (amortizes per-step overhead on v7x).
    out_dim_128 = _round_up(out_dim, 128)
    TN = out_dim_128 if out_dim_128 <= 8192 else 4096
    Np = _round_up(out_dim_128, TN)

    # ---- padding (sliced off after the call) -------------------------------
    if Bp != B:
        x = jnp.pad(x, ((0, Bp - B), (0, 0)))
    if Np != out_dim:
        w3 = jnp.pad(w3, ((0, 0), (0, Np - out_dim)))
        b3 = jnp.pad(b3, ((0, 0), (0, Np - out_dim)))

    # MXU operands in compute_dtype (bf16 by default); biases stay f32 and are
    # added to the f32 accumulator.  x pre-cast here (halves x DMA).
    xc = x.astype(compute_dtype)
    w1c = w1.astype(compute_dtype)
    w2c = w2.astype(compute_dtype)
    w3c = w3.astype(compute_dtype)

    # ======================= stage 1: fc1 + fc2 =============================
    grid1 = (Bp // TB,)
    vmem1 = (
        2 * (TB * latent_dim * cb)                   # x tiles (double-buffered)
        + 2 * (latent_dim * 128 * cb + 128 * 4)      # w1/b1 (resident)
        + 2 * (128 * 256 * cb + 256 * 4)             # w2/b2 (resident)
        + 2 * (TB * 256 * cb)                        # h2 out tiles
        + (2 << 20)                                  # slack
    )
    vmem1 = int(min(max(vmem1, 16 << 20), 48 << 20))
    cost1 = pl.CostEstimate(
        flops=2 * B * (latent_dim * 128 + 128 * 256),
        transcendentals=B * (128 + 256),
        bytes_accessed=(Bp * latent_dim * cb
                        + latent_dim * 128 * cb + 128 * 4
                        + 128 * 256 * cb + 256 * 4
                        + Bp * 256 * cb),
    )
    h2 = pl.pallas_call(
        functools.partial(_fc12_kernel, compute_dtype=compute_dtype),
        out_shape=jax.ShapeDtypeStruct((Bp, 256), compute_dtype),
        grid_spec=pltpu.PrefetchScalarGridSpec(
            num_scalar_prefetch=0,
            grid=grid1,
            in_specs=[
                pl.BlockSpec((TB, latent_dim), lambda i: (i, 0)),   # x: stream
                pl.BlockSpec((latent_dim, 128), lambda i: (0, 0)),  # w1 resident
                pl.BlockSpec((1, 128), lambda i: (0, 0)),           # b1 resident
                pl.BlockSpec((128, 256), lambda i: (0, 0)),         # w2 resident
                pl.BlockSpec((1, 256), lambda i: (0, 0)),           # b2 resident
            ],
            out_specs=pl.BlockSpec((TB, 256), lambda i: (i, 0)),
        ),
        compiler_params=pltpu.CompilerParams(
            dimension_semantics=("parallel",),
            vmem_limit_bytes=vmem1,
        ),
        cost_estimate=cost1,
    )(xc, w1c, b1, w2c, b2)

    # ======================= stage 2: fc3 + tanh ============================
    # Grid = (j: fc3 N tile [outer], i: batch tile [inner]).  w3/b3 index maps
    # depend only on j, so each w3 tile is DMA'd once and stays VMEM-resident
    # while all batch tiles stream past it.  All output blocks are independent
    # -> both axes "parallel" (v7x uses both TCs even for a single batch tile).
    grid2 = (Np // TN, Bp // TB)
    vmem2 = (
        2 * (TB * 256 * cb)                          # h2 tiles
        + 2 * (256 * TN * cb + TN * 4)               # w3/b3 tiles
        + 2 * (TB * TN * ob)                         # out tiles
        + (2 << 20)                                  # slack
    )
    vmem2 = int(min(max(vmem2, 16 << 20), 48 << 20))
    cost2 = pl.CostEstimate(
        flops=2 * B * 256 * out_dim,
        transcendentals=B * out_dim,
        bytes_accessed=(Bp * 256 * cb * (Np // TN)   # h2 re-read per N tile
                        + 256 * Np * cb + Np * 4     # w3/b3: single pass
                        + Bp * Np * ob),             # output writeback
    )
    flat = pl.pallas_call(
        _fc3_kernel,
        out_shape=jax.ShapeDtypeStruct((Bp, Np), out_dtype),
        grid_spec=pltpu.PrefetchScalarGridSpec(
            num_scalar_prefetch=0,
            grid=grid2,
            in_specs=[
                pl.BlockSpec((TB, 256), lambda j, i: (i, 0)),   # h2: stream rows
                pl.BlockSpec((256, TN), lambda j, i: (0, j)),   # w3: once per j
                pl.BlockSpec((1, TN), lambda j, i: (0, j)),     # b3: once per j
            ],
            out_specs=pl.BlockSpec((TB, TN), lambda j, i: (i, j)),
        ),
        compiler_params=pltpu.CompilerParams(
            dimension_semantics=("parallel", "parallel"),
            vmem_limit_bytes=vmem2,
        ),
        cost_estimate=cost2,
    )(h2, w3c, b3)

    # Slice padding off, then reshape to NCHW.
    return flat[:B, :out_dim].reshape(B, ch, shape, shape)


def init_params(key, latent_dim, ch, shape):
    """Deterministic init mimicking PyTorch nn.Linear default
    (uniform in +/- 1/sqrt(fan_in)). Weights stored as (in, out)."""
    dims = [(latent_dim, 128), (128, 256), (256, ch * shape * shape)]
    params = []
    for (fan_in, fan_out) in dims:
        key, kw, kb = jax.random.split(key, 3)
        bound = 1.0 / jnp.sqrt(fan_in)
        w = jax.random.uniform(kw, (fan_in, fan_out), jnp.float32, -bound, bound)
        b = jax.random.uniform(kb, (1, fan_out), jnp.float32, -bound, bound)
        params += [w, b]
    return params


def fc_decoder_ref(x, params, *, ch, shape):
    """Pure-JAX f32 reference for verification."""
    w1, b1, w2, b2, w3, b3 = params
    h1 = jax.nn.silu(x @ w1 + b1)
    h2 = jax.nn.silu(h1 @ w2 + b2)
    h3 = jnp.tanh(h2 @ w3 + b3)
    return h3.reshape(x.shape[0], ch, shape, shape)


if __name__ == "__main__":
    B = 2
    latent_dim = 32
    shape = 16
    ch = 4

    key = jax.random.PRNGKey(0)
    key, kx = jax.random.split(key)
    x = jax.random.normal(kx, (B, latent_dim), jnp.float32)
    params = init_params(key, latent_dim, ch, shape)

    ref = fc_decoder_ref(x, params, ch=ch, shape=shape)

    # 1) f32 mode: bit-accurate vs. the pure-JAX reference.
    out_f32 = jax.block_until_ready(
        fc_decoder(x, params, ch=ch, shape=shape, compute_dtype=jnp.float32))
    assert out_f32.shape == (B, ch, shape, shape), out_f32.shape
    assert jnp.allclose(out_f32, ref, atol=1e-5, rtol=1e-5), \
        float(jnp.max(jnp.abs(out_f32 - ref)))

    # 2) bf16-operand / f32-accumulate mode (the performance path): looser
    #    tolerance per bf16 operand quantization (tanh-bounded outputs).
    out_bf16 = jax.block_until_ready(
        fc_decoder(x, params, ch=ch, shape=shape, compute_dtype=jnp.bfloat16))
    assert out_bf16.shape == (B, ch, shape, shape), out_bf16.shape
    assert jnp.allclose(out_bf16, ref, atol=3e-2, rtol=0.0), \
        float(jnp.max(jnp.abs(out_bf16 - ref)))

    print("KERNEL_OK")
</pallas_src>

<mosaic_0001>
module attributes {stable_mosaic.version = 11 : i64} {
  func.func @_fc12_kernel(%arg0: i32, %arg1: memref<8x32xf32, #tpu.memory_space<vmem>>, %arg2: memref<32x128xf32, #tpu.memory_space<vmem>>, %arg3: memref<1x128xf32, #tpu.memory_space<vmem>>, %arg4: memref<128x256xf32, #tpu.memory_space<vmem>>, %arg5: memref<1x256xf32, #tpu.memory_space<vmem>>, %arg6: memref<8x256xf32, #tpu.memory_space<vmem>>) attributes {dimension_semantics = [#tpu.dimension_semantics<parallel>], iteration_bounds = array<i64: 1>, scalar_prefetch = 0 : i64, scratch_operands = 0 : i64, tpu.core_type = #tpu.core_type<tc>, window_params = [{transform_indices = @transform_0, window_bounds = array<i64: 8, 32>}, {pipeline_mode = #tpu.pipeline_mode<synchronous>, transform_indices = @transform_1, window_bounds = array<i64: 32, 128>}, {pipeline_mode = #tpu.pipeline_mode<synchronous>, transform_indices = @transform_2, window_bounds = array<i64: 1, 128>}, {pipeline_mode = #tpu.pipeline_mode<synchronous>, transform_indices = @transform_3, window_bounds = array<i64: 128, 256>}, {pipeline_mode = #tpu.pipeline_mode<synchronous>, transform_indices = @transform_4, window_bounds = array<i64: 1, 256>}, {transform_indices = @transform_5, window_bounds = array<i64: 8, 256>}]} {
    %c0 = arith.constant 0 : index
    %c0_0 = arith.constant 0 : index
    %0 = vector.load %arg1[%c0, %c0_0] : memref<8x32xf32, #tpu.memory_space<vmem>>, vector<8x32xf32>
    %c0_1 = arith.constant 0 : index
    %c0_2 = arith.constant 0 : index
    %1 = vector.load %arg2[%c0_1, %c0_2] : memref<32x128xf32, #tpu.memory_space<vmem>>, vector<32x128xf32>
    %cst = arith.constant dense<0.000000e+00> : vector<8x128xf32>
    %2 = tpu.matmul %0, %1, %cst {dimension_numbers = #tpu.dot_dimension_numbers<[1], [0], [0], [1], [0, 0, 1, 1], [], []>} : vector<8x32xf32>, vector<32x128xf32>, vector<8x128xf32> -> vector<8x128xf32>
    %c0_3 = arith.constant 0 : index
    %c0_4 = arith.constant 0 : index
    %3 = vector.load %arg3[%c0_3, %c0_4] : memref<1x128xf32, #tpu.memory_space<vmem>>, vector<1x128xf32>
    %4 = vector.broadcast %3 : vector<1x128xf32> to vector<8x128xf32>
    %5 = arith.addf %2, %4 : vector<8x128xf32>
    %6 = arith.negf %5 : vector<8x128xf32>
    %7 = math.exp %6 : vector<8x128xf32>
    %cst_5 = arith.constant 1.000000e+00 : f32
    %8 = vector.broadcast %cst_5 : f32 to vector<8x128xf32>
    %9 = arith.addf %8, %7 : vector<8x128xf32>
    %10 = arith.divf %8, %9 : vector<8x128xf32>
    %11 = arith.mulf %5, %10 : vector<8x128xf32>
    %c0_6 = arith.constant 0 : index
    %c0_7 = arith.constant 0 : index
    %12 = vector.load %arg4[%c0_6, %c0_7] : memref<128x256xf32, #tpu.memory_space<vmem>>, vector<128x256xf32>
    %cst_8 = arith.constant dense<0.000000e+00> : vector<8x256xf32>
    %13 = tpu.matmul %11, %12, %cst_8 {dimension_numbers = #tpu.dot_dimension_numbers<[1], [0], [0], [1], [0, 0, 1, 1], [], []>} : vector<8x128xf32>, vector<128x256xf32>, vector<8x256xf32> -> vector<8x256xf32>
    %c0_9 = arith.constant 0 : index
    %c0_10 = arith.constant 0 : index
    %14 = vector.load %arg5[%c0_9, %c0_10] : memref<1x256xf32, #tpu.memory_space<vmem>>, vector<1x256xf32>
    %15 = vector.broadcast %14 : vector<1x256xf32> to vector<8x256xf32>
    %16 = arith.addf %13, %15 : vector<8x256xf32>
    %17 = arith.negf %16 : vector<8x256xf32>
    %18 = math.exp %17 : vector<8x256xf32>
    %cst_11 = arith.constant 1.000000e+00 : f32
    %19 = vector.broadcast %cst_11 : f32 to vector<8x256xf32>
    %20 = arith.addf %19, %18 : vector<8x256xf32>
    %21 = arith.divf %19, %20 : vector<8x256xf32>
    %22 = arith.mulf %16, %21 : vector<8x256xf32>
    %c0_12 = arith.constant 0 : index
    %c0_13 = arith.constant 0 : index
    %23 = vector.load %arg6[%c0_12, %c0_13] : memref<8x256xf32, #tpu.memory_space<vmem>>, vector<8x256xf32>
    tpu.vector_store %arg6[%c0_12, %c0_13], %22 {strides = array<i32>} : memref<8x256xf32, #tpu.memory_space<vmem>>, vector<8x256xf32>,
    return
  }
  func.func @transform_0(%arg0: i32) -> (i32, i32) {
    %c0_i32 = arith.constant 0 : i32
    %c0_i32_0 = arith.constant 0 : i32
    return %arg0, %c0_i32 : i32, i32
  }
  func.func @transform_1(%arg0: i32) -> (i32, i32) {
    %c0_i32 = arith.constant 0 : i32
    %c0_i32_0 = arith.constant 0 : i32
    %c0_i32_1 = arith.constant 0 : i32
    return %c0_i32, %c0_i32_0 : i32, i32
  }
  func.func @transform_2(%arg0: i32) -> (i32, i32) {
    %c0_i32 = arith.constant 0 : i32
    %c0_i32_0 = arith.constant 0 : i32
    %c0_i32_1 = arith.constant 0 : i32
    return %c0_i32, %c0_i32_0 : i32, i32
  }
  func.func @transform_3(%arg0: i32) -> (i32, i32) {
    %c0_i32 = arith.constant 0 : i32
    %c0_i32_0 = arith.constant 0 : i32
    %c0_i32_1 = arith.constant 0 : i32
    return %c0_i32, %c0_i32_0 : i32, i32
  }
  func.func @transform_4(%arg0: i32) -> (i32, i32) {
    %c0_i32 = arith.constant 0 : i32
    %c0_i32_0 = arith.constant 0 : i32
    %c0_i32_1 = arith.constant 0 : i32
    return %c0_i32, %c0_i32_0 : i32, i32
  }
  func.func @transform_5(%arg0: i32) -> (i32, i32) {
    %c0_i32 = arith.constant 0 : i32
    %c0_i32_0 = arith.constant 0 : i32
    return %arg0, %c0_i32 : i32, i32
  }
}

</mosaic_0001>

<bundles_post_ra>
// kernel: tpu_custom_call.1
= control target key start
LH: loop header
LB: loop body
LE: loop exit
PB: predicated region body
PF: predicated region fallthrough
CT: control target
= control target key end

     0   :  { %10 = vsyncpa [#allocation3], 0  ;;  %s487_s0 = inlined_call_operand.hbm [shape: f32[8,32], index: 0, kind: input, shape index: {}]   ;;  %s488_s1 = inlined_call_operand.hbm [shape: f32[32,128], index: 1, kind: input, shape index: {}]   ;;  %s489_s2 = inlined_call_operand.vmem [shape: f32[1,128], index: 2, kind: input, shape index: {}]   ;;  %s490_s3 = inlined_call_operand.hbm [shape: f32[128,256], index: 3, kind: input, shape index: {}]   ;;  %s491_s4 = inlined_call_operand.vmem [shape: f32[1,256], index: 4, kind: input, shape index: {}]   ;;  %s492_s5 = inlined_call_operand.hbm [shape: f32[8,256], index: 5, kind: output, shape index: {}]  }
   0x1   :  { %11 = vsyncpa [#allocation6], 0 }
   0x2   :  { %12 = vsyncpa [#allocation4], 0  ;;  %s429_s18 = smov [#allocation5]  }
   0x3   :  { %s28_s19 = sshll.u32 %s429_s18, 4  ;;  %s29_s19 = int_to_ptr.vmem [resolvable:$true] %s28_s19 }
   0x4   :  { %s351_s20 = scalar_lea.vmem %s29_s19, 512  ;;  %p356_p1 = scmp.lt.s32.totalorder %s29_s19, %s29_s19 }
   0x5   :  { %p352_p0 = scmp.ne.s32.totalorder %s29_s19, %s351_s20  ;;  %p357_p2 = scmp.lt.s32.totalorder %s351_s20, %s351_s20 }
   0x7   :  { %p358_p3 = por %p357_p2, %p356_p1 }
   0x9   :  { %p359_p4 = pnand %p358_p3, %p352_p0 }
   0xb   :  { %362 = shalt.err (!%p359_p4)
}
   0xc   :  { %s430_s21 = smov 128   ;;  %s431_s22 = smov 8  }
   0xd   :  { %34 = dma.hbm_to_vmem [thread:$0]  %s488_s1, 512, %s29_s19, [#allocation6], %s430_s21, %s430_s21, %s431_s22  }
   0xe   :  { %s432_s25 = smov [#allocation2]   ;;  %s433_s27 = smov [#allocation7]  }
   0xf   :  { %s19_s26 = sshll.u32 %s432_s25, 4  ;;  %s42_s28 = sshll.u32 %s433_s27, 4  ;;  %s20_s26 = int_to_ptr.vmem [resolvable:$true] %s19_s26  ;;  %s43_s28 = int_to_ptr.vmem [resolvable:$true] %s42_s28 }
  0x10   :  { %s371_s29 = scalar_lea.vmem %s20_s26, 128  ;;  %p376_p6 = scmp.lt.s32.totalorder %s20_s26, %s20_s26 }
  0x11   :  { %p372_p5 = scmp.ne.s32.totalorder %s20_s26, %s371_s29  ;;  %p377_p7 = scmp.lt.s32.totalorder %s371_s29, %s371_s29 }
  0x13   :  { %p378_p8 = por %p377_p7, %p376_p6 }
  0x15   :  { %p379_p9 = pnand %p378_p8, %p372_p5 }
  0x17   :  { %382 = shalt.err (!%p379_p9)
}
  0x18   :  { %22 = dma.hbm_to_vmem [thread:$0]  %s487_s0, 128, %s20_s26, [#allocation3]  }
  0x19   :  { %s391_s7 = scalar_lea.vmem %s43_s28, 4096  ;;  %p396_p11 = scmp.lt.s32.totalorder %s43_s28, %s43_s28 }
  0x1a   :  { %p392_p10 = scmp.ne.s32.totalorder %s43_s28, %s391_s7  ;;  %p397_p12 = scmp.lt.s32.totalorder %s391_s7, %s391_s7 }
  0x1c   :  { %p398_p13 = por %p397_p12, %p396_p11 }
  0x1e   :  { %p399_p0 = pnand %p398_p13, %p392_p10 }
  0x20   :  { %402 = shalt.err (!%p399_p0)
}
  0x21   :  { %s434_s1 = smov 256   ;;  %s435_s8 = smov 16  }
  0x22   :  { %48 = dma.hbm_to_vmem [thread:$0]  %s490_s3, 4096, %s43_s28, [#allocation6], %s434_s1, %s434_s1, %s435_s8  }
  0x23   :  { %423 = dma.done.wait [#allocation3], 128  }
  0x24   :  { %424 = vsyncadd [#allocation3], 4294967168 }
  0x25   :  { %425 = dma.done.wait [#allocation6], 4608  }
  0x26   :  { %426 = vsyncadd [#allocation6], 4294962688  ;;  %v436_v0 = vmov 0.0   ;;  %vm437_vm0 = vmmov 0   ;;  %v64_v1 = vld [vmem:[#allocation5 + $0x18] sm:$0xff]  ;;  %v63_v2 = vld [vmem:[#allocation5 + $0x10] sm:$0xff]  ;;  %v187_v47 = vlaneseq }
  0x27   :  { %310 = vmatprep.subr.mxu0 %v436_v0  ;;  %318 = vmatprep.mubr.msk.f32.mxu0 %vm437_vm0, %v436_v0  ;;  %v62_v3 = vld [vmem:[#allocation5 + $0x8] sm:$0xff]  ;;  %v61_v4 = vld [vmem:[#allocation5] sm:$0xff]  ;;  %v60_v5 = vld [vmem:[#allocation2] sm:$0xff]  ;;  %vm72_vm1 = vcmask 261120  }
  0x28   :  { %261 = vmatprep.mubr.f32.mxu1 %v436_v0  ;;  %311 = vmatpush3.msra.mxu0 %v64_v1  ;;  %v184_v6 = vld [vmem:[#allocation7 + $0xf8] sm:$0xff]  ;;  %v183_v7 = vld [vmem:[#allocation7 + $0xf0] sm:$0xff]  ;;  %v182_v8 = vld [vmem:[#allocation7 + $0xe8] sm:$0xff]  ;;  %v188_v48 = vshrl.u32 %v187_v47, 7 }
  0x29   :  { %312 = vmatprep.subr.mxu0 %v436_v0  ;;  %197 = vmatprep.subr.mxu1 %v184_v6  ;;  %v181_v9 = vld [vmem:[#allocation7 + $0xe0] sm:$0xff]  ;;  %v180_v10 = vld [vmem:[#allocation7 + $0xd8] sm:$0xff]  ;;  %v179_v11 = vld [vmem:[#allocation7 + $0xd0] sm:$0xff] }
  0x2a   :  { %313 = vmatpush3.msra.mxu0 %v63_v2  ;;  %198 = vmatpush1.msra.mxu1 %v183_v7  ;;  %v178_v12 = vld [vmem:[#allocation7 + $0xc8] sm:$0xff]  ;;  %v177_v13 = vld [vmem:[#allocation7 + $0xc0] sm:$0xff]  ;;  %v176_v14 = vld [vmem:[#allocation7 + $0xb8] sm:$0xff]  ;;  %v189_v49 = vsub.s32 0, %v188_v48  ;;  %v193_v51 = vsub.s32 1, %v188_v48 }
  0x2b   :  { %314 = vmatprep.subr.mxu0 %v436_v0  ;;  %199 = vmatprep.subr.mxu1 %v182_v8  ;;  %v175_v15 = vld [vmem:[#allocation7 + $0xb0] sm:$0xff]  ;;  %v174_v16 = vld [vmem:[#allocation7 + $0xa8] sm:$0xff]  ;;  %v173_v17 = vld [vmem:[#allocation7 + $0xa0] sm:$0xff] }
  0x2c   :  { %315 = vmatpush3.msra.mxu0 %v62_v3  ;;  %200 = vmatpush1.msra.mxu1 %v181_v9  ;;  %v172_v18 = vld [vmem:[#allocation7 + $0x98] sm:$0xff]  ;;  %v171_v19 = vld [vmem:[#allocation7 + $0x90] sm:$0xff]  ;;  %v170_v20 = vld [vmem:[#allocation7 + $0x88] sm:$0xff] }
  0x2d   :  { %316 = vmatprep.subr.mxu0 %v436_v0  ;;  %201 = vmatprep.subr.mxu1 %v180_v10  ;;  %v169_v21 = vld [vmem:[#allocation7 + $0x80] sm:$0xff]  ;;  %v168_v22 = vld [vmem:[#allocation7 + $0x78] sm:$0xff]  ;;  %v167_v23 = vld [vmem:[#allocation7 + $0x70] sm:$0xff] }
  0x2e   :  { %317 = vmatpush3.msra.mxu0 %v61_v4  ;;  %202 = vmatpush1.msra.mxu1 %v179_v11  ;;  %v166_v24 = vld [vmem:[#allocation7 + $0x68] sm:$0xff]  ;;  %v165_v25 = vld [vmem:[#allocation7 + $0x60] sm:$0xff]  ;;  %v164_v26 = vld [vmem:[#allocation7 + $0x58] sm:$0xff] }
  0x2f   :  { %319 = vmatmul.mubr.msk.f32.vlgmr.msra.gmra.mxu0 %vm72_vm1, %v60_v5  ;;  %203 = vmatprep.subr.mxu1 %v178_v12  ;;  %v163_v27 = vld [vmem:[#allocation7 + $0x50] sm:$0xff]  ;;  %v162_v28 = vld [vmem:[#allocation7 + $0x48] sm:$0xff]  ;;  %v161_v29 = vld [vmem:[#allocation7 + $0x40] sm:$0xff] }
  0x30   :  { %204 = vmatpush1.msra.mxu1 %v177_v13  ;;  %v160_v30 = vld [vmem:[#allocation7 + $0x38] sm:$0xff]  ;;  %v159_v31 = vld [vmem:[#allocation7 + $0x30] sm:$0xff]  ;;  %v158_v32 = vld [vmem:[#allocation7 + $0x28] sm:$0xff] }
  0x31   :  { %205 = vmatprep.subr.mxu1 %v176_v14  ;;  %v157_v33 = vld [vmem:[#allocation7 + $0x20] sm:$0xff]  ;;  %v156_v34 = vld [vmem:[#allocation7 + $0x18] sm:$0xff]  ;;  %v155_v35 = vld [vmem:[#allocation7 + $0x10] sm:$0xff] }
  0x32   :  { %206 = vmatpush1.msra.mxu1 %v175_v15  ;;  %v154_v36 = vld [vmem:[#allocation7 + $0x8] sm:$0xff]  ;;  %v153_v37 = vld [vmem:[#allocation7] sm:$0xff]  ;;  %v300_v38 = vld [vmem:[%s489_s2] ss:$0 sm:$0xff]  ;;  %s438_s2 = smov [#allocation8]  }
  0x33   :  { %207 = vmatprep.subr.mxu1 %v174_v16  ;;  %v185_v50 = vld [vmem:[%s491_s4] sm:$0x3]  ;;  %s290_s4 = sshll.u32 %s438_s2, 4  ;;  %s291_s4 = int_to_ptr.vmem [resolvable:$true] %s290_s4 }
  0x34   :  { %208 = vmatpush1.msra.mxu1 %v173_v17  ;;  %v190_v52 = vrot.slane %v185_v50, %v189_v49  ;;  %v194_v53 = vrot.slane %v185_v50, %v193_v51  ;;  %s403_s13 = scalar_lea.vmem %s291_s4, 256  ;;  %p408_p2 = scmp.lt.s32.totalorder %s291_s4, %s291_s4 }
  0x35   :  { %209 = vmatprep.subr.mxu1 %v172_v18  ;;  %p404_p1 = scmp.ne.s32.totalorder %s291_s4, %s403_s13  ;;  %p409_p3 = scmp.lt.s32.totalorder %s403_s13, %s403_s13 }
  0x36   :  { %210 = vmatpush1.msra.mxu1 %v171_v19 }
  0x37   :  { %211 = vmatprep.subr.mxu1 %v170_v20  ;;  %p410_p4 = por %p409_p3, %p408_p2 }
  0x38   :  { %212 = vmatpush1.msra.mxu1 %v169_v21 }
  0x39   :  { %213 = vmatprep.subr.mxu1 %v168_v22  ;;  %p411_p5 = pnand %p410_p4, %p404_p1 }
  0x3a   :  { %214 = vmatpush1.msra.mxu1 %v167_v23 }
  0x3b   :  { %215 = vmatprep.subr.mxu1 %v166_v24 }
  0x3c   :  { %216 = vmatpush1.msra.mxu1 %v165_v25 }
  0x3d   :  { %217 = vmatprep.subr.mxu1 %v164_v26 }
  0x3e   :  { %218 = vmatpush1.msra.mxu1 %v163_v27 }
  0x3f   :  { %219 = vmatprep.subr.mxu1 %v162_v28 }
  0x40   :  { %220 = vmatpush1.msra.mxu1 %v161_v29 }
  0x41   :  { %221 = vmatprep.subr.mxu1 %v160_v30 }
  0x42   :  { %222 = vmatpush1.msra.mxu1 %v159_v31 }
  0x43   :  { %223 = vmatprep.subr.mxu1 %v158_v32 }
  0x44   :  { %224 = vmatpush1.msra.mxu1 %v157_v33 }
  0x45   :  { %225 = vmatprep.subr.mxu1 %v156_v34 }
  0x46   :  { %226 = vmatpush1.msra.mxu1 %v155_v35 }
  0x47   :  { %227 = vmatprep.subr.mxu1 %v154_v36 }
  0x48   :  { %228 = vmatpush1.msra.mxu1 %v153_v37 }
  0xef   :  { %v142_v39 = vpop.f32.mrf.mxu0 }
  0xf0   :  { %v143_v40 = vadd.f32 %v300_v38, %v142_v39 }
  0xf1   :  { %v320_v41 = vpop.f32.mrf.mxu0 }
  0xf2   :  { %v302_v42 = vmul.f32 -1.442695, %v143_v40 }
  0xf4   :  { %331 = vpow2.f32 %v302_v42 }
 0x101   :  { %v332_v43 = vpop.eup %331 }
 0x102   :  { %v149_v44 = vadd.f32 1.0, %v332_v43 }
 0x104   :  { %333 = vrcp.f32 %v149_v44 }
 0x111   :  { %v334_v45 = vpop.eup %333 }
 0x112   :  { %v152_v46 = vmul.f32 %v334_v45, %v143_v40 }
 0x114   :  { %262 = vmatmul.mubr.f32.vlgmr.msra.gmra.mxu1 %v152_v46 }
 0x1d4   :  { %v263_v54 = vpop.f32.mrf.mxu1 }
 0x1d5   :  { %v264_v55 = vadd.f32 %v263_v54, %v190_v52 }
 0x1d6   :  { %v265_v56 = vpop.f32.mrf.mxu1 }
 0x1d7   :  { %v303_v57 = vmul.f32 -1.442695, %v264_v55  ;;  %v266_v58 = vadd.f32 %v265_v56, %v194_v53 }
 0x1d9   :  { %335 = vpow2.f32 %v303_v57  ;;  %v304_v59 = vmul.f32 -1.442695, %v266_v58 }
 0x1db   :  { %337 = vpow2.f32 %v304_v59 }
 0x1e6   :  { %v336_v60 = vpop.eup %335 }
 0x1e7   :  { %v274_v61 = vadd.f32 1.0, %v336_v60 }
 0x1e8   :  { %v338_v62 = vpop.eup %337 }
 0x1e9   :  { %339 = vrcp.f32 %v274_v61  ;;  %v275_v63 = vadd.f32 1.0, %v338_v62 }
 0x1eb   :  { %341 = vrcp.f32 %v275_v63 }
 0x1f6   :  { %v340_v0 = vpop.eup %339 }
 0x1f7   :  { %v280_v1 = vmul.f32 %v340_v0, %v264_v55 }
 0x1f8   :  { %v342_v2 = vpop.eup %341 }
 0x1f9   :  { %282 = vst [vmem:[#allocation8] sm:$0xff] %v280_v1  ;;  %v281_v3 = vmul.f32 %v342_v2, %v266_v58 }
 0x1fb   :  { %283 = vst [vmem:[#allocation8 + $0x8] sm:$0xff] %v281_v3 }
 0x1fc   :  { %414 = shalt.err (!%p411_p5)
}
 0x1fd   :  { %293 = dma.vmem_to_hbm [thread:$0]  %s291_s4, 256, %s492_s5, [#allocation4]  }
 0x1fe   :  { %427 = dma.done.wait [#allocation4], 256  }
 0x1ff   :  { %428 = vsyncadd [#allocation4], 4294967040 }
 0x200   :  { %297 = vsyncpa [#allocation3], 1 }
 0x201   :  { %298 = vsyncpa [#allocation6], 1 }
 0x202   :  { %299 = vsyncpa [#allocation4], 1 }

</bundles_post_ra>
